<compile_context>
chip_gen: v7x
topology: tpu7x:2x2x1
jax: 0.10.0
libtpu: 0.0.40
codegen_flags: <defaults>
</compile_context>

<pallas_src>
import functools

import jax
import jax.numpy as jnp
from jax import lax
from jax.experimental import pallas as pl
from jax.experimental.pallas import tpu as pltpu

_LANE = 128                       # lane (fast) axis width
_TARGET_BLOCK_BYTES = 4 * 1024 * 1024   # ~4 MiB per input per grid step


def _sublane_multiple(dtype) -> int:
    # Packed sublane tile height: 8 rows for 32-bit, 16 for 16-bit, 32 for 8-bit.
    return {4: 8, 2: 16, 1: 32}.get(jnp.dtype(dtype).itemsize, 8)


def _num_tensorcores() -> int:
    # v7x (and v4 megacore) expose 2 TensorCores per chip; v5e/v6e have 1.
    try:
        kind = jax.devices()[0].device_kind.lower()
    except Exception:
        return 1
    return 2 if ("v7" in kind or "v4" in kind) else 1


def _dice_partial_kernel(x_ref, t_ref, o_ref, *, blocks_per_core, valid_rows,
                         block_rows, needs_mask):
    c = pl.program_id(0)   # core ("parallel") axis
    i = pl.program_id(1)   # reduction ("arbitrary") axis

    @pl.when(i == 0)
    def _init():
        o_ref[...] = jnp.zeros_like(o_ref)

    def _accumulate(x, t):
        # (block_rows, 128) -> (block_rows//8, 8, 128); sum over the leading
        # axis is vreg-wise VALU accumulation into an (8, 128) tile — no XLU
        # cross-sublane reduce on the per-step path.
        xr = x.reshape(block_rows // 8, 8, _LANE)
        tr = t.reshape(block_rows // 8, 8, _LANE)
        o_ref[0] += jnp.sum(xr * tr, axis=0)
        o_ref[1] += jnp.sum(xr, axis=0)
        o_ref[2] += jnp.sum(tr, axis=0)

    if not needs_mask:
        # Everything divides evenly (trace-time known): no masking anywhere.
        _accumulate(x_ref[...].astype(jnp.float32),
                    t_ref[...].astype(jnp.float32))
    else:
        block_start = (c * blocks_per_core + i) * block_rows
        is_edge = (block_start + block_rows) > valid_rows

        @pl.when(jnp.logical_not(is_edge))
        def _fast():
            _accumulate(x_ref[...].astype(jnp.float32),
                        t_ref[...].astype(jnp.float32))

        @pl.when(is_edge)
        def _masked():
            # Tail block (partial rows) or a clamped duplicate block (fully
            # masked): zero rows beyond the valid extent before accumulating.
            row_ids = lax.broadcasted_iota(jnp.int32, (block_rows, 1), 0)
            mask = (block_start + row_ids) < valid_rows
            x = jnp.where(mask, x_ref[...].astype(jnp.float32), 0.0)
            t = jnp.where(mask, t_ref[...].astype(jnp.float32), 0.0)
            _accumulate(x, t)


def dice_loss(inputs, targets, smooth=0.0):
    """Pallas implementation of DiceLoss.forward (returns a scalar f32)."""
    x = inputs.reshape(-1)
    t = targets.reshape(-1)
    n = x.shape[0]

    sub = max(_sublane_multiple(x.dtype), _sublane_multiple(t.dtype))
    max_itemsize = max(jnp.dtype(x.dtype).itemsize, jnp.dtype(t.dtype).itemsize)

    rows_all = n // _LANE
    # Only send at least one full packed sublane tile through the kernel;
    # anything smaller is handled by the tiny plain-JAX epilogue below.
    rows = rows_all if rows_all >= sub else 0
    n_main = rows * _LANE

    inter = jnp.float32(0.0)
    sum_x = jnp.float32(0.0)
    sum_t = jnp.float32(0.0)

    if rows > 0:
        x2 = (x if n_main == n else x[:n_main]).reshape(rows, _LANE)
        t2 = (t if n_main == n else t[:n_main]).reshape(rows, _LANE)

        # ~4 MiB per input per grid step, rounded to the packed sublane tile.
        max_rows = max(sub,
                       (_TARGET_BLOCK_BYTES // (_LANE * max_itemsize)) // sub * sub)
        block_rows = min(max_rows, (rows // sub) * sub)

        total_blocks = pl.cdiv(rows, block_rows)
        num_cores = min(_num_tensorcores(), total_blocks)
        bpc = pl.cdiv(total_blocks, num_cores)          # blocks per core
        needs_mask = (rows % block_rows != 0) or (num_cores * bpc != total_blocks)

        def in_map(c, i):
            # Clamp so duplicated/overflow programs re-read a valid block;
            # their contribution is zeroed by the in-kernel row mask.
            return (jnp.minimum(c * bpc + i, total_blocks - 1), 0)

        kernel = functools.partial(
            _dice_partial_kernel,
            blocks_per_core=bpc, valid_rows=rows, block_rows=block_rows,
            needs_mask=needs_mask)

        # 2 inputs x 2 pipeline buffers x block, plus headroom; keep <= 64 MiB
        # so it is always legal on v7x's 64 MiB per-TC VMEM.
        block_bytes = block_rows * _LANE * max_itemsize
        vmem_limit = min(64 * 1024 * 1024,
                         max(32 * 1024 * 1024, 4 * block_bytes + (4 << 20)))

        partials = pl.pallas_call(
            kernel,
            out_shape=jax.ShapeDtypeStruct((num_cores * 3, 8, _LANE),
                                           jnp.float32),
            grid_spec=pltpu.PrefetchScalarGridSpec(
                num_scalar_prefetch=0,
                grid=(num_cores, bpc),
                in_specs=[
                    pl.BlockSpec((block_rows, _LANE), in_map),
                    pl.BlockSpec((block_rows, _LANE), in_map),
                ],
                # Output block is resident across the "arbitrary" axis and used
                # directly as the (3, 8, 128) f32 accumulator per core.
                out_specs=pl.BlockSpec((3, 8, _LANE), lambda c, i: (c, 0, 0)),
            ),
            compiler_params=pltpu.CompilerParams(
                dimension_semantics=("parallel", "arbitrary"),
                vmem_limit_bytes=vmem_limit),
        )(x2, t2)

        parts = partials.reshape(num_cores, 3, 8, _LANE)
        inter = inter + jnp.sum(parts[:, 0])
        sum_x = sum_x + jnp.sum(parts[:, 1])
        sum_t = sum_t + jnp.sum(parts[:, 2])

    if n_main < n:
        # Sub-tile remainder: tiny plain-JAX epilogue (avoids a pad copy).
        x_tail = x[n_main:].astype(jnp.float32)
        t_tail = t[n_main:].astype(jnp.float32)
        inter = inter + jnp.sum(x_tail * t_tail)
        sum_x = sum_x + jnp.sum(x_tail)
        sum_t = sum_t + jnp.sum(t_tail)

    smooth = jnp.float32(smooth)
    # NOTE: with smooth == 0 and all-zero inputs/targets this is 0/0 = NaN,
    # exactly like the PyTorch reference.
    dice = (2.0 * inter + smooth) / (sum_x + sum_t + smooth)
    return 1.0 - dice


def _dice_loss_ref(inputs, targets, smooth=0.0):
    x = inputs.reshape(-1).astype(jnp.float32)
    t = targets.reshape(-1).astype(jnp.float32)
    intersection = jnp.sum(x * t)
    dice = (2.0 * intersection + smooth) / (jnp.sum(x) + jnp.sum(t) + smooth)
    return 1.0 - dice


if __name__ == "__main__":
    key = jax.random.PRNGKey(0)
    k1, k2, k3, k4 = jax.random.split(key, 4)

    ok = True

    # Segmentation-style probabilities/targets: (B, C, H, W) = (2, 4, 16, 16).
    inputs = jax.nn.sigmoid(
        jax.random.normal(k1, (2, 4, 16, 16), dtype=jnp.float32))
    targets = (jax.random.uniform(k2, (2, 4, 16, 16)) > 0.5).astype(jnp.float32)
    for smooth in (0.0, 1.0):
        out = jax.block_until_ready(dice_loss(inputs, targets, smooth))
        ref = jax.block_until_ready(_dice_loss_ref(inputs, targets, smooth))
        ok &= bool(jnp.allclose(out, ref, rtol=1e-5, atol=1e-5))

    # bf16 inputs exercise the 16-row packed-sublane path.
    out = jax.block_until_ready(
        dice_loss(inputs.astype(jnp.bfloat16), targets.astype(jnp.bfloat16), 1.0))
    ref = jax.block_until_ready(
        _dice_loss_ref(inputs.astype(jnp.bfloat16), targets.astype(jnp.bfloat16), 1.0))
    ok &= bool(jnp.allclose(out, ref, rtol=1e-5, atol=1e-5))

    # Ragged shape exercising the masked tail block and the plain-JAX remainder.
    xr = jax.nn.sigmoid(jax.random.normal(k3, (3, 5, 7, 11), dtype=jnp.float32))
    tr = (jax.random.uniform(k4, (3, 5, 7, 11)) > 0.5).astype(jnp.float32)
    out = jax.block_until_ready(dice_loss(xr, tr, 1.0))
    ref = jax.block_until_ready(_dice_loss_ref(xr, tr, 1.0))
    ok &= bool(jnp.allclose(out, ref, rtol=1e-5, atol=1e-5))

    assert ok
    print("KERNEL_OK")
</pallas_src>

<mosaic_0001>
module attributes {stable_mosaic.version = 11 : i64} {
  func.func @_dice_partial_kernel(%arg0: i32, %arg1: i32, %arg2: memref<16x128xf32, #tpu.memory_space<vmem>>, %arg3: memref<16x128xf32, #tpu.memory_space<vmem>>, %arg4: memref<3x8x128xf32, #tpu.memory_space<vmem>>) attributes {dimension_semantics = [#tpu.dimension_semantics<parallel>, #tpu.dimension_semantics<arbitrary>], iteration_bounds = array<i64: 1, 1>, scalar_prefetch = 0 : i64, scratch_operands = 0 : i64, tpu.core_type = #tpu.core_type<tc>, window_params = [{transform_indices = @transform_0, window_bounds = array<i64: 16, 128>}, {transform_indices = @transform_1, window_bounds = array<i64: 16, 128>}, {transform_indices = @transform_2, window_bounds = array<i64: 3, 8, 128>}]} {
    %c0_i32 = arith.constant 0 : i32
    %0 = arith.cmpi eq, %arg1, %c0_i32 : i32
    %1 = arith.extui %0 : i1 to i32
    %c0_i32_0 = arith.constant 0 : i32
    %2 = arith.cmpi ne, %1, %c0_i32_0 : i32
    scf.if %2 {
      %cst_22 = arith.constant 0.000000e+00 : f32
      %29 = vector.broadcast %cst_22 : f32 to vector<3x8x128xf32>
      %c0_23 = arith.constant 0 : index
      %c0_24 = arith.constant 0 : index
      %c0_25 = arith.constant 0 : index
      %30 = vector.load %arg4[%c0_23, %c0_24, %c0_25] : memref<3x8x128xf32, #tpu.memory_space<vmem>>, vector<3x8x128xf32>
      tpu.vector_store %arg4[%c0_23, %c0_24, %c0_25], %29 {strides = array<i32>} : memref<3x8x128xf32, #tpu.memory_space<vmem>>, vector<3x8x128xf32>,
    } else {
    }
    %c0 = arith.constant 0 : index
    %c0_1 = arith.constant 0 : index
    %3 = vector.load %arg2[%c0, %c0_1] : memref<16x128xf32, #tpu.memory_space<vmem>>, vector<16x128xf32>
    %c0_2 = arith.constant 0 : index
    %c0_3 = arith.constant 0 : index
    %4 = vector.load %arg3[%c0_2, %c0_3] : memref<16x128xf32, #tpu.memory_space<vmem>>, vector<16x128xf32>
    %5 = vector.shape_cast %3 : vector<16x128xf32> to vector<2x8x128xf32>
    %6 = vector.shape_cast %4 : vector<16x128xf32> to vector<2x8x128xf32>
    %c0_4 = arith.constant 0 : index
    %c0_5 = arith.constant 0 : index
    %c0_6 = arith.constant 0 : index
    %7 = vector.load %arg4[%c0_4, %c0_5, %c0_6] : memref<3x8x128xf32, #tpu.memory_space<vmem>>, vector<1x8x128xf32>
    %8 = vector.shape_cast %7 : vector<1x8x128xf32> to vector<8x128xf32>
    %9 = arith.mulf %5, %6 : vector<2x8x128xf32>
    %cst = arith.constant dense<0.000000e+00> : vector<8x128xf32>
    %10 = vector.multi_reduction <add>, %9, %cst [0] : vector<2x8x128xf32> to vector<8x128xf32>
    %11 = arith.addf %8, %10 : vector<8x128xf32>
    %c0_7 = arith.constant 0 : index
    %c0_8 = arith.constant 0 : index
    %c0_9 = arith.constant 0 : index
    %12 = vector.load %arg4[%c0_7, %c0_8, %c0_9] : memref<3x8x128xf32, #tpu.memory_space<vmem>>, vector<1x8x128xf32>
    %13 = vector.shape_cast %12 : vector<1x8x128xf32> to vector<8x128xf32>
    %14 = vector.shape_cast %11 : vector<8x128xf32> to vector<1x8x128xf32>
    tpu.vector_store %arg4[%c0_7, %c0_8, %c0_9], %14 {strides = array<i32>} : memref<3x8x128xf32, #tpu.memory_space<vmem>>, vector<1x8x128xf32>,
    %c1 = arith.constant 1 : index
    %c0_10 = arith.constant 0 : index
    %c0_11 = arith.constant 0 : index
    %15 = vector.load %arg4[%c1, %c0_10, %c0_11] : memref<3x8x128xf32, #tpu.memory_space<vmem>>, vector<1x8x128xf32>
    %16 = vector.shape_cast %15 : vector<1x8x128xf32> to vector<8x128xf32>
    %cst_12 = arith.constant dense<0.000000e+00> : vector<8x128xf32>
    %17 = vector.multi_reduction <add>, %5, %cst_12 [0] : vector<2x8x128xf32> to vector<8x128xf32>
    %18 = arith.addf %16, %17 : vector<8x128xf32>
    %c1_13 = arith.constant 1 : index
    %c0_14 = arith.constant 0 : index
    %c0_15 = arith.constant 0 : index
    %19 = vector.load %arg4[%c1_13, %c0_14, %c0_15] : memref<3x8x128xf32, #tpu.memory_space<vmem>>, vector<1x8x128xf32>
    %20 = vector.shape_cast %19 : vector<1x8x128xf32> to vector<8x128xf32>
    %21 = vector.shape_cast %18 : vector<8x128xf32> to vector<1x8x128xf32>
    tpu.vector_store %arg4[%c1_13, %c0_14, %c0_15], %21 {strides = array<i32>} : memref<3x8x128xf32, #tpu.memory_space<vmem>>, vector<1x8x128xf32>,
    %c2 = arith.constant 2 : index
    %c0_16 = arith.constant 0 : index
    %c0_17 = arith.constant 0 : index
    %22 = vector.load %arg4[%c2, %c0_16, %c0_17] : memref<3x8x128xf32, #tpu.memory_space<vmem>>, vector<1x8x128xf32>
    %23 = vector.shape_cast %22 : vector<1x8x128xf32> to vector<8x128xf32>
    %cst_18 = arith.constant dense<0.000000e+00> : vector<8x128xf32>
    %24 = vector.multi_reduction <add>, %6, %cst_18 [0] : vector<2x8x128xf32> to vector<8x128xf32>
    %25 = arith.addf %23, %24 : vector<8x128xf32>
    %c2_19 = arith.constant 2 : index
    %c0_20 = arith.constant 0 : index
    %c0_21 = arith.constant 0 : index
    %26 = vector.load %arg4[%c2_19, %c0_20, %c0_21] : memref<3x8x128xf32, #tpu.memory_space<vmem>>, vector<1x8x128xf32>
    %27 = vector.shape_cast %26 : vector<1x8x128xf32> to vector<8x128xf32>
    %28 = vector.shape_cast %25 : vector<8x128xf32> to vector<1x8x128xf32>
    tpu.vector_store %arg4[%c2_19, %c0_20, %c0_21], %28 {strides = array<i32>} : memref<3x8x128xf32, #tpu.memory_space<vmem>>, vector<1x8x128xf32>,
    return
  }
  func.func @transform_0(%arg0: i32, %arg1: i32) -> (i32, i32) {
    %c1_i32 = arith.constant 1 : i32
    %0 = arith.muli %arg0, %c1_i32 : i32
    %1 = arith.addi %0, %arg1 : i32
    %c0_i32 = arith.constant 0 : i32
    %2 = arith.minsi %1, %c0_i32 : i32
    %c0_i32_0 = arith.constant 0 : i32
    %c0_i32_1 = arith.constant 0 : i32
    return %2, %c0_i32_0 : i32, i32
  }
  func.func @transform_1(%arg0: i32, %arg1: i32) -> (i32, i32) {
    %c1_i32 = arith.constant 1 : i32
    %0 = arith.muli %arg0, %c1_i32 : i32
    %1 = arith.addi %0, %arg1 : i32
    %c0_i32 = arith.constant 0 : i32
    %2 = arith.minsi %1, %c0_i32 : i32
    %c0_i32_0 = arith.constant 0 : i32
    %c0_i32_1 = arith.constant 0 : i32
    return %2, %c0_i32_0 : i32, i32
  }
  func.func @transform_2(%arg0: i32, %arg1: i32) -> (i32, i32, i32) {
    %c0_i32 = arith.constant 0 : i32
    %c0_i32_0 = arith.constant 0 : i32
    %c0_i32_1 = arith.constant 0 : i32
    return %arg0, %c0_i32, %c0_i32_0 : i32, i32, i32
  }
}

</mosaic_0001>

<bundles_post_ra>
// kernel: tpu_custom_call.1
= control target key start
LH: loop header
LB: loop body
LE: loop exit
PB: predicated region body
PF: predicated region fallthrough
CT: control target
= control target key end

     0   :  { %7 = vsyncpa [#allocation3], 0  ;;  %s252_s0 = inlined_call_operand.hbm [shape: f32[16,128], index: 0, kind: input, shape index: {}]   ;;  %s253_s1 = inlined_call_operand.hbm [shape: f32[16,128], index: 1, kind: input, shape index: {}]   ;;  %s254_s2 = inlined_call_operand.hbm [shape: f32[3,8,128], index: 2, kind: output, shape index: {}]  }
   0x1   :  { %8 = vsyncpa [#allocation6], 0 }
   0x2   :  { %9 = vsyncpa [#allocation4], 0  ;;  %s187_s9 = smov [#allocation2]   ;;  %s115_s13 = scalar_lea.hbm %s252_s0, 256 }
   0x3   :  { %s21_s10 = sshll.u32 %s187_s9, 4  ;;  %p116_p0 = scmp.ne.s32.totalorder %s252_s0, %s115_s13  ;;  %s22_s10 = int_to_ptr.vmem [resolvable:$true] %s21_s10 }
   0x4   :  { %p119_p1 = scmp.lt.u32.totalorder %s115_s13, %s252_s0 }
   0x6   :  { %p121_p2 = pnand %p119_p1, %p116_p0 }
   0x8   :  { %124 = shalt.err (!%p121_p2)
}
   0x9   :  { %s125_s18 = scalar_lea.vmem %s22_s10, 256  ;;  %p130_p4 = scmp.lt.s32.totalorder %s22_s10, %s22_s10 }
   0xa   :  { %p126_p3 = scmp.ne.s32.totalorder %s22_s10, %s125_s18  ;;  %p131_p5 = scmp.lt.s32.totalorder %s125_s18, %s125_s18 }
   0xc   :  { %p132_p6 = por %p131_p5, %p130_p4 }
   0xe   :  { %p133_p7 = pnand %p132_p6, %p126_p3 }
  0x10   :  { %136 = shalt.err (!%p133_p7)
}
  0x11   :  { %s188_s19 = smov 128   ;;  %s189_s20 = smov 8  }
  0x12   :  { %27 = dma.hbm_to_vmem [thread:$0]  %s252_s0, 256, %s22_s10, [#allocation3], %s188_s19, %s188_s19, %s189_s20  }
  0x13   :  { %s190_s23 = smov [#allocation5]   ;;  %s137_s27 = scalar_lea.hbm %s253_s1, 256 }
  0x14   :  { %s39_s24 = sshll.u32 %s190_s23, 4  ;;  %p138_p8 = scmp.ne.s32.totalorder %s253_s1, %s137_s27  ;;  %s40_s24 = int_to_ptr.vmem [resolvable:$true] %s39_s24 }
  0x15   :  { %p141_p9 = scmp.lt.u32.totalorder %s137_s27, %s253_s1 }
  0x17   :  { %p143_p10 = pnand %p141_p9, %p138_p8 }
  0x19   :  { %146 = shalt.err (!%p143_p10)
}
  0x1a   :  { %s147_s4 = scalar_lea.vmem %s40_s24, 256  ;;  %p152_p12 = scmp.lt.s32.totalorder %s40_s24, %s40_s24 }
  0x1b   :  { %p148_p11 = scmp.ne.s32.totalorder %s40_s24, %s147_s4  ;;  %p153_p13 = scmp.lt.s32.totalorder %s147_s4, %s147_s4 }
  0x1d   :  { %p154_p0 = por %p153_p13, %p152_p12 }
  0x1f   :  { %p155_p1 = pnand %p154_p0, %p148_p11 }
  0x21   :  { %158 = shalt.err (!%p155_p1)
}
  0x22   :  { %45 = dma.hbm_to_vmem [thread:$0]  %s253_s1, 256, %s40_s24, [#allocation6], %s188_s19, %s188_s19, %s189_s20  }
  0x23   :  { %181 = dma.done.wait [#allocation3], 256  }
  0x24   :  { %182 = vsyncadd [#allocation3], 4294967040 }
  0x25   :  { %183 = dma.done.wait [#allocation6], 256  }
  0x26   :  { %184 = vsyncadd [#allocation6], 4294967040  ;;  %v67_v0 = vld [vmem:[#allocation2] sm:$0xff]  ;;  %v68_v1 = vld [vmem:[#allocation2 + $0x8] sm:$0xff]  ;;  %s191_s6 = smov [#allocation7]  }
  0x27   :  { %v69_v2 = vld [vmem:[#allocation5] sm:$0xff]  ;;  %v70_v3 = vld [vmem:[#allocation5 + $0x8] sm:$0xff]  ;;  %v79_v5 = vadd.f32 %v68_v1, %v67_v0  ;;  %s92_s7 = sshll.u32 %s191_s6, 4  ;;  %s93_s7 = int_to_ptr.vmem [resolvable:$true] %s92_s7 }
  0x28   :  { %v72_v4 = vmul.f32 %v69_v2, %v67_v0  ;;  %v73_v6 = vmul.f32 %v70_v3, %v68_v1  ;;  %v84_v7 = vadd.f32 %v70_v3, %v69_v2  ;;  %s159_s1 = scalar_lea.vmem %s93_s7, 384  ;;  %p164_p3 = scmp.lt.s32.totalorder %s93_s7, %s93_s7 }
  0x29   :  { %81 = vst [vmem:[#allocation7 + $0x8] sm:$0xff] %v79_v5  ;;  %p160_p2 = scmp.ne.s32.totalorder %s93_s7, %s159_s1  ;;  %p165_p4 = scmp.lt.s32.totalorder %s159_s1, %s159_s1 }
  0x2a   :  { %v74_v8 = vadd.f32 %v73_v6, %v72_v4  ;;  %86 = vst [vmem:[#allocation7 + $0x10] sm:$0xff] %v84_v7 }
  0x2b   :  { %p166_p5 = por %p165_p4, %p164_p3 }
  0x2c   :  { %76 = vst [vmem:[#allocation7] sm:$0xff] %v74_v8 }
  0x2d   :  { %p167_p6 = pnand %p166_p5, %p160_p2 }
  0x2f   :  { %170 = shalt.err (!%p167_p6)
}
  0x30   :  { %s171_s10 = scalar_lea.hbm %s254_s2, 384 }
  0x31   :  { %p172_p7 = scmp.ne.s32.totalorder %s254_s2, %s171_s10  ;;  %p175_p8 = scmp.lt.u32.totalorder %s171_s10, %s254_s2 }
  0x33   :  { %p177_p9 = pnand %p175_p8, %p172_p7 }
  0x35   :  { %180 = shalt.err (!%p177_p9)
}
  0x36   :  { %98 = dma.vmem_to_hbm [thread:$0]  %s93_s7, 384, %s254_s2, [#allocation4], %s188_s19, %s188_s19, %s189_s20  }
  0x37   :  { %185 = dma.done.wait [#allocation4], 384  }
  0x38   :  { %186 = vsyncadd [#allocation4], 4294966912 }
  0x39   :  { %102 = vsyncpa [#allocation3], 1 }
  0x3a   :  { %103 = vsyncpa [#allocation6], 1 }
  0x3b   :  { %104 = vsyncpa [#allocation4], 1 }

</bundles_post_ra>
